<compile_context>
chip_gen: v7x
topology: tpu7x:2x2x1
jax: 0.10.0
libtpu: 0.0.40
codegen_flags: <defaults>
</compile_context>

<pallas_src>
import functools
import numpy as np
import jax
import jax.numpy as jnp
from jax.experimental import pallas as pl
from jax.experimental.pallas import tpu as pltpu


_VMEM_LIMIT = 48 * 1024 * 1024   # <= v7x's 64 MiB/TC with headroom


def _round_up(x, m):
    return (x + m - 1) // m * m


# ------------------------------ exact GELU (erf) ------------------------------

def _erf_approx(z):
    # Abramowitz & Stegun 7.1.26, |err| < 1.5e-7 (below bf16/f32 MXU noise).
    a1, a2, a3, a4, a5 = (0.254829592, -0.284496736, 1.421413741,
                          -1.453152027, 1.061405429)
    p = 0.3275911
    sgn = jnp.where(z >= 0.0, 1.0, -1.0)
    az = jnp.abs(z)
    t = pl.reciprocal(1.0 + p * az, approx=True)   # EUP slot, off the VPU path
    poly = ((((a5 * t + a4) * t + a3) * t + a2) * t + a1) * t
    return sgn * (1.0 - poly * jnp.exp(-az * az))


def _gelu_exact(x):
    # nn.GELU() default (erf-based, not tanh approximation).
    return 0.5 * x * (1.0 + _erf_approx(x * 0.7071067811865476))


# ----------------------------- tiled GEMM kernel ------------------------------

def _gemm_kernel(x_ref, w_ref, b_ref, o_ref, *, nk, scale, activation):
    @pl.when(pl.program_id(2) == 0)
    def _():
        o_ref[...] = jnp.zeros_like(o_ref)

    # accumulate straight into the VMEM-resident f32 output block (no scratch)
    o_ref[...] += jnp.dot(x_ref[...], w_ref[...],
                          preferred_element_type=jnp.float32)

    @pl.when(pl.program_id(2) == nk - 1)
    def _():
        y = (o_ref[...] + b_ref[...]) * scale
        if activation == "gelu":
            y = _gelu_exact(y)
        o_ref[...] = y


def pallas_gemm(x, w, b, *, scale=1.0, activation=None):
    """out = act((x @ w + b) * scale); x:(M,K), w:(K,N) (N pre-padded to a
    multiple of 128 at init), b:(1,N) f32.  bf16 operands, f32 accumulation
    directly in the output block, fused epilogue."""
    M, K = x.shape
    K2, N = w.shape
    assert K == K2 and b.shape == (1, N) and N % 128 == 0

    if M <= 512:
        Mp, tm = _round_up(M, 16), _round_up(M, 16)
    else:
        Mp = _round_up(M, 256)
        tm = 512 if Mp % 512 == 0 else 256
    tn = next(t for t in (512, 256, 128) if N % t == 0)
    if K <= 1024:
        Kp, tk = K, K                      # single K tile (full-dim block)
    else:
        Kp, tk = _round_up(K, 512), 512
    # keep >=2 parallel tiles when possible so both v7x TensorCores get work
    if N // tn == 1 and Mp // tm == 1 and Mp >= 32:
        tm = Mp // 2

    xp = x.astype(jnp.bfloat16)
    if (Mp, Kp) != (M, K):
        xp = jnp.pad(xp, ((0, Mp - M), (0, Kp - K)))
    wp = w.astype(jnp.bfloat16)
    if Kp != K:
        wp = jnp.pad(wp, ((0, Kp - K), (0, 0)))

    grid = (Mp // tm, N // tn, Kp // tk)
    kernel = functools.partial(_gemm_kernel, nk=grid[2], scale=float(scale),
                               activation=activation)
    out = pl.pallas_call(
        kernel,
        out_shape=jax.ShapeDtypeStruct((Mp, N), jnp.float32),
        grid_spec=pltpu.PrefetchScalarGridSpec(
            num_scalar_prefetch=0,
            grid=grid,
            in_specs=[
                pl.BlockSpec((tm, tk), lambda i, j, k: (i, k)),
                pl.BlockSpec((tk, tn), lambda i, j, k: (k, j)),
                pl.BlockSpec((1, tn), lambda i, j, k: (0, j)),
            ],
            out_specs=pl.BlockSpec((tm, tn), lambda i, j, k: (i, j)),
        ),
        compiler_params=pltpu.CompilerParams(
            dimension_semantics=("parallel", "parallel", "arbitrary"),
            vmem_limit_bytes=_VMEM_LIMIT,
        ),
        cost_estimate=pl.CostEstimate(
            flops=2 * Mp * N * Kp,
            transcendentals=Mp * N if activation == "gelu" else 0,
            bytes_accessed=Mp * Kp * 2 + Kp * N * 2 + N * 4 + Mp * N * 4,
        ),
    )(xp, wp, b)
    if Mp != M:
        out = out[:M]
    return out


# -------------------- Inception block as a fused conv kernel ------------------

def _incep_conv_kernel(z_ref, wcol_ref, w_ref, b_ref, o_ref, acc_ref,
                       *, taps, wdim, L, scale, activation):
    acc_ref[...] = jnp.zeros_like(acc_ref)
    wcol = wcol_ref[0]                                     # (L, 1) int32
    for (t, start, dx) in taps:
        zs = z_ref[0, pl.ds(start, L), :]                  # (L, Cin) bf16, static slice
        if dx != 0:
            m = jnp.logical_and(wcol >= -dx, wcol < wdim - dx)
            zs = jnp.where(m, zs, jnp.zeros_like(zs))
        acc_ref[...] += jnp.dot(zs, w_ref[t],
                                preferred_element_type=jnp.float32)
    y = (acc_ref[...] + b_ref[...]) * scale
    if activation == "gelu":
        y = _gelu_exact(y)
    o_ref[0] = y.astype(o_ref.dtype)


def pallas_inception_conv(zpad, w, b, *, H, W, n_kernels, activation):
    """Inception_Block_V1 (mean over n_kernels 'same' Conv2d's) folded into one
    effective (2n-1)x(2n-1) conv, evaluated on the flattened (B, L=H*W, C)
    activation.  The input block stays VMEM-resident per batch element; every
    tap is a statically shifted window of it (no HBM im2col).

    zpad: (B, L + 2*P0, Cin) bf16  with P0 = (n-1)*W + (n-1) zeros on both ends
    w:    (taps, Cin, Cout) bf16   (summed per-kernel weights, zero-padded)
    b:    (1, Cout) f32            (summed per-kernel biases)
    """
    B, Lp2, Cin = zpad.shape
    n_taps, Cin2, Cout = w.shape
    p = n_kernels - 1
    ksz = 2 * p + 1
    L = H * W
    P0 = p * W + p
    assert n_taps == ksz * ksz and Cin2 == Cin and Lp2 == L + 2 * P0
    assert Cin % 128 == 0 and Cout % 128 == 0

    taps = []
    for dy in range(-p, p + 1):
        if dy >= H or dy <= -H:            # entire tap lies in the conv zero-pad
            continue
        for dx in range(-p, p + 1):
            if dx >= W or dx <= -W:        # entire tap masked out along W
                continue
            taps.append(((dy + p) * ksz + (dx + p), P0 + dy * W + dx, dx))

    # per-row W coordinate (avoids in-kernel integer modulo)
    wcol = (jnp.arange(L, dtype=jnp.int32) % W).reshape(1, L, 1)

    kernel = functools.partial(_incep_conv_kernel, taps=tuple(taps), wdim=W,
                               L=L, scale=1.0 / n_kernels, activation=activation)
    # TODO(synk): tile Cout (extra grid axis) for very large d_ffn so the full
    # (taps, Cin, Cout) weight slab never has to fit in VMEM at once.
    out = pl.pallas_call(
        kernel,
        out_shape=jax.ShapeDtypeStruct((B, L, Cout), jnp.bfloat16),
        grid_spec=pltpu.PrefetchScalarGridSpec(
            num_scalar_prefetch=0,
            grid=(B,),
            in_specs=[
                pl.BlockSpec((1, Lp2, Cin), lambda bb: (bb, 0, 0)),
                pl.BlockSpec((1, L, 1), lambda bb: (0, 0, 0)),
                pl.BlockSpec((ksz * ksz, Cin, Cout), lambda bb: (0, 0, 0)),
                pl.BlockSpec((1, Cout), lambda bb: (0, 0)),
            ],
            out_specs=pl.BlockSpec((1, L, Cout), lambda bb: (bb, 0, 0)),
            scratch_shapes=[pltpu.VMEM((L, Cout), jnp.float32)],
        ),
        compiler_params=pltpu.CompilerParams(
            dimension_semantics=("parallel",),
            vmem_limit_bytes=_VMEM_LIMIT,
        ),
        cost_estimate=pl.CostEstimate(
            flops=2 * B * L * Cin * Cout * len(taps),
            transcendentals=B * L * Cout if activation == "gelu" else 0,
            bytes_accessed=B * Lp2 * Cin * 2 + n_taps * Cin * Cout * 2
                           + B * L * Cout * 2,
        ),
    )(zpad, wcol, w, b)
    return out


# --------------- fused (weighted period sum + residual + LayerNorm) ----------

def _combine_ln_kernel(*refs, k, d_true, eps):
    x_ref, w_ref, g_ref, b_ref = refs[:4]
    res_refs = refs[4:4 + k]
    o_ref = refs[4 + k]
    acc = x_ref[0]                                         # (T, Dp) f32 residual
    wv = w_ref[0]                                          # (1, k) softmax weights
    for j in range(k):
        acc = acc + res_refs[j][0].astype(jnp.float32) * wv[:, j:j + 1]
    lane = jax.lax.broadcasted_iota(jnp.int32, acc.shape, 1)
    valid = (lane < d_true).astype(jnp.float32)            # mask padded lanes
    mean = jnp.sum(acc * valid, axis=-1, keepdims=True) * (1.0 / d_true)
    cent = (acc - mean) * valid
    var = jnp.sum(cent * cent, axis=-1, keepdims=True) * (1.0 / d_true)
    inv = jax.lax.rsqrt(var + eps)
    o_ref[0] = cent * inv * g_ref[...] + b_ref[...]


def pallas_combine_layernorm(x, res_list, w_soft, ln_g, ln_b, d_true, eps=1e-5):
    """LayerNorm(x + sum_k res[k] * w[:, k]); x:(B,T,Dp) f32, res:(B,T,Dp) bf16,
    w_soft:(B,1,k) f32.  Residuals arrive as separate bf16 inputs (no stack)."""
    B, T, Dp = x.shape
    k = len(res_list)
    in_specs = [
        pl.BlockSpec((1, T, Dp), lambda bb: (bb, 0, 0)),
        pl.BlockSpec((1, 1, k), lambda bb: (bb, 0, 0)),
        pl.BlockSpec((1, Dp), lambda bb: (0, 0)),
        pl.BlockSpec((1, Dp), lambda bb: (0, 0)),
    ] + [pl.BlockSpec((1, T, Dp), lambda bb: (bb, 0, 0)) for _ in range(k)]
    return pl.pallas_call(
        functools.partial(_combine_ln_kernel, k=k, d_true=int(d_true),
                          eps=float(eps)),
        out_shape=jax.ShapeDtypeStruct((B, T, Dp), jnp.float32),
        grid_spec=pltpu.PrefetchScalarGridSpec(
            num_scalar_prefetch=0,
            grid=(B,),
            in_specs=in_specs,
            out_specs=pl.BlockSpec((1, T, Dp), lambda bb: (bb, 0, 0)),
        ),
        compiler_params=pltpu.CompilerParams(
            dimension_semantics=("parallel",),
            vmem_limit_bytes=_VMEM_LIMIT,
        ),
    )(x, w_soft, ln_g, ln_b, *res_list)


# ---------------------- imputation + masked-MSE kernel ------------------------

def _impute_mse_kernel(x_ref, m_ref, dec_ref, ori_ref, ind_ref,
                       imp_ref, num_ref, den_ref, *, tm):
    @pl.when(pl.program_id(0) == 0)
    def _():
        num_ref[...] = jnp.zeros_like(num_ref)
        den_ref[...] = jnp.zeros_like(den_ref)
    x, m, dec = x_ref[...], m_ref[...], dec_ref[...]
    imp_ref[...] = m * x + (1.0 - m) * dec
    ind = ind_ref[...]
    diff = dec - ori_ref[...]
    sq = ind * diff * diff
    for c in range(tm // 8):                    # fold (tm,128) into resident (8,128)
        num_ref[...] += sq[c * 8:(c + 1) * 8, :]
        den_ref[...] += ind[c * 8:(c + 1) * 8, :]


def pallas_impute_and_mse(X, masks, dec, X_ori, ind_mask):
    B, T, F = X.shape
    total = B * T * F
    rows = -(-total // 128)                      # lane-dense (rows, 128) layout
    tm = min(128, _round_up(rows, 8))
    Rp = _round_up(rows, tm)
    P = Rp * 128

    def prep(a):
        v = a.reshape(-1).astype(jnp.float32)
        if P != total:
            v = jnp.pad(v, (0, P - total))
        return v.reshape(Rp, 128)

    nt = Rp // tm
    imp, num, den = pl.pallas_call(
        functools.partial(_impute_mse_kernel, tm=tm),
        out_shape=(jax.ShapeDtypeStruct((Rp, 128), jnp.float32),
                   jax.ShapeDtypeStruct((8, 128), jnp.float32),
                   jax.ShapeDtypeStruct((8, 128), jnp.float32)),
        grid_spec=pltpu.PrefetchScalarGridSpec(
            num_scalar_prefetch=0,
            grid=(nt,),
            in_specs=[pl.BlockSpec((tm, 128), lambda i: (i, 0))] * 5,
            out_specs=(pl.BlockSpec((tm, 128), lambda i: (i, 0)),
                       pl.BlockSpec((8, 128), lambda i: (0, 0)),
                       pl.BlockSpec((8, 128), lambda i: (0, 0))),
        ),
        compiler_params=pltpu.CompilerParams(
            dimension_semantics=("arbitrary",),
            vmem_limit_bytes=_VMEM_LIMIT,
        ),
    )(prep(X), prep(masks), prep(dec), prep(X_ori), prep(ind_mask))
    loss = jnp.sum(num) / (jnp.sum(den) + 1e-12)
    imputed = imp.reshape(-1)[:total].reshape(B, T, F)
    return imputed, loss


# -------------------------- model pieces (JAX glue) ---------------------------

def _sinusoid_table(n_pos, d_hid):
    pos = np.arange(n_pos)[:, None].astype(np.float64)
    j = np.arange(d_hid)[None, :]
    angle = pos / np.power(10000.0, (2 * (j // 2)) / d_hid)
    table = np.zeros((n_pos, d_hid))
    table[:, 0::2] = np.sin(angle[:, 0::2])
    table[:, 1::2] = np.cos(angle[:, 1::2])
    return table


def data_embedding(p, X):
    """TokenEmbedding (circular Conv1d k=3, bias=False) + positional encoding.
    Output is carried lane-padded to Dp (padded lanes are exactly zero)."""
    B, T, F = X.shape
    xp = jnp.concatenate([X[:, -1:, :], X, X[:, :1, :]], axis=1)   # circular pad
    cols = jnp.concatenate([xp[:, t:t + T, :] for t in range(3)], axis=-1)
    val = pallas_gemm(cols.reshape(B * T, 3 * F), p["tok_w"], p["tok_b"])
    val = val.reshape(B, T, -1)
    # nn.Dropout: identity (deterministic / eval-mode dropout)
    return val + p["pos"][None, :T, :]


def fft_for_period(x, k, d_true):
    # TODO(synk): jax.device_get forces a host sync per layer (mirrors the
    # PyTorch code's .numpy() + dynamic reshape); cache periods per dataset or
    # use a static candidate-period set to make the whole forward jittable.
    xf = jnp.fft.rfft(x, axis=1)
    amp = jnp.abs(xf)                                   # (B, T//2+1, Dp)
    freq = jnp.sum(amp, axis=(0, 2))                    # scale-free for top-k
    freq = freq.at[0].set(0.0)
    k = max(1, min(k, int(freq.shape[0]) - 1))
    _, top = jax.lax.top_k(freq, k)
    top = np.asarray(jax.device_get(top))
    top = np.maximum(top, 1)                            # guard degenerate spectra
    periods = np.maximum(x.shape[1] // top, 1)
    period_weight = jnp.sum(amp, axis=2)[:, top] / d_true   # (B, k)
    return periods, period_weight


def times_block_ln(lp, x, ln_g, ln_b, top_k, n_kernels, d_true):
    """TimesBlock followed by LayerNorm; the softmax-weighted period sum,
    residual add and LayerNorm are fused into one Pallas kernel."""
    B, T, Dp = x.shape
    periods, period_weight = fft_for_period(x, top_k, d_true)
    pmax = n_kernels - 1
    x_bf16 = x.astype(jnp.bfloat16)
    res_list = []
    for i in range(len(periods)):
        period = int(periods[i])
        length = ((T + period - 1) // period) * period
        H, W = length // period, period
        P0 = pmax * W + pmax
        # time extension to `length` + conv halo in a single pad
        zpad = jnp.pad(x_bf16, ((0, 0), (P0, P0 + length - T), (0, 0)))
        y1 = pallas_inception_conv(zpad, lp["incep1"]["w"], lp["incep1"]["b"],
                                   H=H, W=W, n_kernels=n_kernels,
                                   activation="gelu")
        y1p = jnp.pad(y1, ((0, 0), (P0, P0), (0, 0)))
        y2 = pallas_inception_conv(y1p, lp["incep2"]["w"], lp["incep2"]["b"],
                                   H=H, W=W, n_kernels=n_kernels,
                                   activation=None)
        res_list.append(y2[:, :T, :])                   # (B, T, Dp) bf16
    k_eff = len(res_list)
    w_soft = jax.nn.softmax(period_weight, axis=1).reshape(B, 1, k_eff)
    return pallas_combine_layernorm(x, res_list, w_soft, ln_g, ln_b, d_true)


def nonstationary_norm(X, mask):
    cnt = jnp.sum((mask == 1).astype(X.dtype), axis=1, keepdims=True) + 1e-9
    means = jnp.sum(X, axis=1, keepdims=True) / cnt
    Xc = jnp.where(mask == 0, 0.0, X - means)
    var = jnp.sum(Xc * Xc, axis=1, keepdims=True) + 1e-9
    stdev = jnp.sqrt(var / cnt)
    return Xc / stdev, means, stdev


def nonstationary_denorm(X, means, stdev):
    return X * stdev + means


def timesnet_forward(params, inputs, cfg, training=True):
    X, masks = inputs["X"], inputs["missing_mask"]
    if cfg["apply_nonstationary_norm"]:
        X, means, stdev = nonstationary_norm(X, masks)
    enc = data_embedding(params["emb"], X)                 # (B, T, Dp) f32
    B, T, Dp = enc.shape
    for lp in params["layers"]:
        enc = times_block_ln(lp, enc, params["ln_g"], params["ln_b"],
                             cfg["top_k"], cfg["n_kernels"], cfg["d_model"])
    dec = pallas_gemm(enc.reshape(B * T, Dp),
                      params["proj_w"], params["proj_b"])
    dec = dec[:, :cfg["n_features"]].reshape(B, T, cfg["n_features"])
    if cfg["apply_nonstationary_norm"]:
        dec = nonstationary_denorm(dec, means, stdev)
    imputed, loss = pallas_impute_and_mse(X, masks, dec,
                                          inputs["X_ori"],
                                          inputs["indicating_mask"])
    results = {"imputed_data": imputed}
    if training:
        results["loss"] = loss
    return results


# ------------------------------- parameters ----------------------------------

def init_inception_effective(key, c_in, c_out, cin_p, cout_p, n_kernels,
                             scale=0.02):
    """Per-kernel Conv2d weights/biases, pre-summed into one effective
    (2n-1)x(2n-1) conv (the 1/n mean is applied in the kernel epilogue),
    pre-padded to lane-dense (Cin_p, Cout_p) and laid out tap-major."""
    p = n_kernels - 1
    ksz = 2 * p + 1
    kw, kb = jax.random.split(key)
    wkeys = jax.random.split(kw, n_kernels)
    w_eff = np.zeros((ksz, ksz, cin_p, cout_p), np.float32)
    for i in range(n_kernels):
        ks = 2 * i + 1
        wi = scale * jax.random.normal(wkeys[i], (ks, ks, c_in, c_out),
                                       jnp.float32)
        off = p - i
        w_eff[off:off + ks, off:off + ks, :c_in, :c_out] += np.asarray(wi)
    bias = scale * jax.random.normal(kb, (n_kernels, c_out), jnp.float32)
    b_eff = np.zeros((1, cout_p), np.float32)
    b_eff[0, :c_out] = np.asarray(jnp.sum(bias, axis=0))
    return {"w": jnp.asarray(w_eff.reshape(ksz * ksz, cin_p, cout_p),
                             jnp.bfloat16),
            "b": jnp.asarray(b_eff)}


def init_params(key, cfg):
    nF, D, Dff = cfg["n_features"], cfg["d_model"], cfg["d_ffn"]
    nL, nK, T = cfg["n_layers"], cfg["n_kernels"], cfg["n_steps"]
    Dp, Dffp, Fp = _round_up(D, 128), _round_up(Dff, 128), _round_up(nF, 128)
    keys = jax.random.split(key, 3 + 2 * nL)
    s = 0.02

    tok_w = np.zeros((3 * nF, Dp), np.float32)
    tok_w[:, :D] = np.asarray(s * jax.random.normal(keys[0], (3 * nF, D),
                                                    jnp.float32))
    pos = np.zeros((T, Dp), np.float32)
    pos[:, :D] = _sinusoid_table(T, D)

    proj_w = np.zeros((Dp, Fp), np.float32)
    proj_w[:D, :nF] = np.asarray(s * jax.random.normal(keys[1], (D, nF),
                                                       jnp.float32))
    proj_b = np.zeros((1, Fp), np.float32)
    proj_b[0, :nF] = np.asarray(s * jax.random.normal(keys[2], (nF,),
                                                      jnp.float32))

    ln_g = np.zeros((1, Dp), np.float32)
    ln_g[0, :D] = 1.0                                   # nn.LayerNorm defaults
    ln_b = np.zeros((1, Dp), np.float32)

    return {
        "emb": {"tok_w": jnp.asarray(tok_w, jnp.bfloat16),
                "tok_b": jnp.zeros((1, Dp), jnp.float32),   # Conv1d bias=False
                "pos": jnp.asarray(pos)},
        "layers": [
            {"incep1": init_inception_effective(keys[3 + 2 * l], D, Dff,
                                                Dp, Dffp, nK),
             "incep2": init_inception_effective(keys[4 + 2 * l], Dff, D,
                                                Dffp, Dp, nK)}
            for l in range(nL)
        ],
        "ln_g": jnp.asarray(ln_g),
        "ln_b": jnp.asarray(ln_b),
        "proj_w": jnp.asarray(proj_w, jnp.bfloat16),
        "proj_b": jnp.asarray(proj_b),
    }


# ---------------------------------- main --------------------------------------

if __name__ == "__main__":
    cfg = dict(n_layers=1, n_steps=16, n_features=4, top_k=2,
               d_model=16, d_ffn=16, n_kernels=3, dropout=0.1,
               apply_nonstationary_norm=False)
    key = jax.random.PRNGKey(0)
    kp, kx, km, ki = jax.random.split(key, 4)
    params = init_params(kp, cfg)

    B, T, F = 2, cfg["n_steps"], cfg["n_features"]
    X_ori = jax.random.normal(kx, (B, T, F), jnp.float32)
    missing_mask = (jax.random.uniform(km, (B, T, F)) > 0.2).astype(jnp.float32)
    indicating_mask = (jax.random.uniform(ki, (B, T, F)) > 0.7).astype(jnp.float32)
    X = X_ori * missing_mask

    inputs = {"X": X, "missing_mask": missing_mask,
              "X_ori": X_ori, "indicating_mask": indicating_mask}

    out = timesnet_forward(params, inputs, cfg, training=True)
    jax.block_until_ready(out["imputed_data"])
    jax.block_until_ready(out["loss"])
    assert out["imputed_data"].shape == (B, T, F)
    assert np.isfinite(np.asarray(jax.device_get(out["loss"])))
    print("KERNEL_OK")
</pallas_src>

<mosaic_0001>
module attributes {stable_mosaic.version = 11 : i64} {
  func.func @_gemm_kernel(%arg0: i32, %arg1: i32, %arg2: i32, %arg3: memref<16x12xbf16, #tpu.memory_space<vmem>>, %arg4: memref<12x128xbf16, #tpu.memory_space<vmem>>, %arg5: memref<1x128xf32, #tpu.memory_space<vmem>>, %arg6: memref<16x128xf32, #tpu.memory_space<vmem>>) attributes {dimension_semantics = [#tpu.dimension_semantics<parallel>, #tpu.dimension_semantics<parallel>, #tpu.dimension_semantics<arbitrary>], iteration_bounds = array<i64: 2, 1, 1>, scalar_prefetch = 0 : i64, scratch_operands = 0 : i64, tpu.core_type = #tpu.core_type<tc>, window_params = [{transform_indices = @transform_0, window_bounds = array<i64: 16, 12>}, {transform_indices = @transform_1, window_bounds = array<i64: 12, 128>}, {transform_indices = @transform_2, window_bounds = array<i64: 1, 128>}, {transform_indices = @transform_3, window_bounds = array<i64: 16, 128>}]} {
    %c0_i32 = arith.constant 0 : i32
    %0 = arith.cmpi eq, %arg2, %c0_i32 : i32
    %1 = arith.extui %0 : i1 to i32
    %c0_i32_0 = arith.constant 0 : i32
    %2 = arith.cmpi ne, %1, %c0_i32_0 : i32
    scf.if %2 {
      %cst_10 = arith.constant 0.000000e+00 : f32
      %12 = vector.broadcast %cst_10 : f32 to vector<16x128xf32>
      %c0_11 = arith.constant 0 : index
      %c0_12 = arith.constant 0 : index
      %13 = vector.load %arg6[%c0_11, %c0_12] : memref<16x128xf32, #tpu.memory_space<vmem>>, vector<16x128xf32>
      tpu.vector_store %arg6[%c0_11, %c0_12], %12 {strides = array<i32>} : memref<16x128xf32, #tpu.memory_space<vmem>>, vector<16x128xf32>,
    } else {
    }
    %c0 = arith.constant 0 : index
    %c0_1 = arith.constant 0 : index
    %3 = vector.load %arg6[%c0, %c0_1] : memref<16x128xf32, #tpu.memory_space<vmem>>, vector<16x128xf32>
    %c0_2 = arith.constant 0 : index
    %c0_3 = arith.constant 0 : index
    %4 = vector.load %arg3[%c0_2, %c0_3] : memref<16x12xbf16, #tpu.memory_space<vmem>>, vector<16x12xbf16>
    %c0_4 = arith.constant 0 : index
    %c0_5 = arith.constant 0 : index
    %5 = vector.load %arg4[%c0_4, %c0_5] : memref<12x128xbf16, #tpu.memory_space<vmem>>, vector<12x128xbf16>
    %cst = arith.constant dense<0.000000e+00> : vector<16x128xf32>
    %6 = tpu.matmul %4, %5, %cst {dimension_numbers = #tpu.dot_dimension_numbers<[1], [0], [0], [1], [0, 0, 1, 1], [], []>} : vector<16x12xbf16>, vector<12x128xbf16>, vector<16x128xf32> -> vector<16x128xf32>
    %7 = arith.addf %3, %6 : vector<16x128xf32>
    %c0_6 = arith.constant 0 : index
    %c0_7 = arith.constant 0 : index
    %8 = vector.load %arg6[%c0_6, %c0_7] : memref<16x128xf32, #tpu.memory_space<vmem>>, vector<16x128xf32>
    tpu.vector_store %arg6[%c0_6, %c0_7], %7 {strides = array<i32>} : memref<16x128xf32, #tpu.memory_space<vmem>>, vector<16x128xf32>,
    %c0_i32_8 = arith.constant 0 : i32
    %9 = arith.cmpi eq, %arg2, %c0_i32_8 : i32
    %10 = arith.extui %9 : i1 to i32
    %c0_i32_9 = arith.constant 0 : i32
    %11 = arith.cmpi ne, %10, %c0_i32_9 : i32
    scf.if %11 {
      %c0_10 = arith.constant 0 : index
      %c0_11 = arith.constant 0 : index
      %12 = vector.load %arg6[%c0_10, %c0_11] : memref<16x128xf32, #tpu.memory_space<vmem>>, vector<16x128xf32>
      %c0_12 = arith.constant 0 : index
      %c0_13 = arith.constant 0 : index
      %13 = vector.load %arg5[%c0_12, %c0_13] : memref<1x128xf32, #tpu.memory_space<vmem>>, vector<1x128xf32>
      %14 = vector.broadcast %13 : vector<1x128xf32> to vector<16x128xf32>
      %15 = arith.addf %12, %14 : vector<16x128xf32>
      %cst_14 = arith.constant 1.000000e+00 : f32
      %16 = vector.broadcast %cst_14 : f32 to vector<16x128xf32>
      %17 = arith.mulf %15, %16 : vector<16x128xf32>
      %c0_15 = arith.constant 0 : index
      %c0_16 = arith.constant 0 : index
      %18 = vector.load %arg6[%c0_15, %c0_16] : memref<16x128xf32, #tpu.memory_space<vmem>>, vector<16x128xf32>
      tpu.vector_store %arg6[%c0_15, %c0_16], %17 {strides = array<i32>} : memref<16x128xf32, #tpu.memory_space<vmem>>, vector<16x128xf32>,
    } else {
    }
    return
  }
  func.func @transform_0(%arg0: i32, %arg1: i32, %arg2: i32) -> (i32, i32) {
    %c0_i32 = arith.constant 0 : i32
    return %arg0, %arg2 : i32, i32
  }
  func.func @transform_1(%arg0: i32, %arg1: i32, %arg2: i32) -> (i32, i32) {
    %c0_i32 = arith.constant 0 : i32
    return %arg2, %arg1 : i32, i32
  }
  func.func @transform_2(%arg0: i32, %arg1: i32, %arg2: i32) -> (i32, i32) {
    %c0_i32 = arith.constant 0 : i32
    %c0_i32_0 = arith.constant 0 : i32
    return %c0_i32, %arg1 : i32, i32
  }
  func.func @transform_3(%arg0: i32, %arg1: i32, %arg2: i32) -> (i32, i32) {
    %c0_i32 = arith.constant 0 : i32
    return %arg0, %arg1 : i32, i32
  }
}

</mosaic_0001>

<bundles_post_ra>
// kernel: tpu_custom_call.1
= control target key start
LH: loop header
LB: loop body
LE: loop exit
PB: predicated region body
PF: predicated region fallthrough
CT: control target
= control target key end

     0   :  { %8 = vsyncpa [#allocation3], 0  ;;  %s780_s0 = inlined_call_operand.vmem [shape: bf16[32,12], index: 0, kind: input, shape index: {}]   ;;  %s781_s1 = inlined_call_operand.vmem [shape: bf16[12,128], index: 1, kind: input, shape index: {}]   ;;  %s782_s2 = inlined_call_operand.vmem [shape: f32[1,128], index: 2, kind: input, shape index: {}]   ;;  %s783_s3 = inlined_call_operand.hbm [shape: f32[32,128], index: 3, kind: output, shape index: {}]  }
   0x1   :  { %10 = vsyncpa [#allocation3 + $0x1], 0  ;;  %s660_s12 = smov 0   ;;  %s662_s13 = smov 0  }
   0x2   :  { %s664_s14 = smov 0   ;;  %s666_s15 = smov 0  }
   0x3   :  { %s668_s16 = smov 0   ;;  %s670_s17 = smov 0  }
   0x4 LB: > { %s466_s18 = sadd.s32 4294967295, %s633_s17   ;;  %s467_s19 = sadd.s32 4294967294, %s633_s17   ;;  %s633_s17 = sphi %s670_s17, %s16_s17   ;;  %s629_s16 = sphi %s668_s16, %s790_s16   ;;  %s625_s15 = sphi %s666_s15, %s789_s15   ;;  %s621_s14 = sphi %s664_s14, %s788_s14   ;;  %s617_s13 = sphi %s662_s13, %s787_s13   ;;  %s613_s12 = sphi %s660_s12, %s786_s12  }
   0x5   : > { %s35_s20 = sadd.s32 1, %s629_s16  ;;  %s126_s21 = sadd.s32 1, %s621_s14 }
   0x6   : > { %p37_p0 = scmp.ge.s32.totalorder %s35_s20, 2  ;;  %p136_p1 = scmp.ne.s32.totalorder %s621_s14, %s617_s13 }
   0x7   : > { %p137_p2 = scmp.eq.s32.totalorder %s466_s18, 1  ;;  %p142_p3 = scmp.ne.s32.totalorder %s617_s13, %s613_s12 }
   0x8   : > { %s792_s20 = smov (%p37_p0, %s35_s20), 0  ;;  %p143_p5 = scmp.eq.s32.totalorder %s467_s19, 1 }
   0x9   : > { %p700_p4 = por %p137_p2, %p136_p1  ;;  %s121_s23 = ssub.s32 %s629_s16, %s792_s20 }
   0xa   : > { %p472_p6 = scmp.ge.s32.totalorder %s633_s17, 1  ;;  %p124_p7 = scmp.eq.s32.totalorder %s121_s23, 0 }
   0xb   : > { %p707_p8 = por %p143_p5, %p142_p3  ;;  %p191_p9 = scmp.lt.s32.totalorder %s633_s17, 3 }
   0xc   : > { %s713_s25 = scalar_select %p124_p7, %s621_s14, %s126_s21  }
   0xd   : > { %p192_p10 = pnand %p472_p6, %p191_p9 }
   0xe   : > { %v635_v0 = vmov (!%p192_p10), 0.0   ;;  %v553_v1 = vld [vmem:[%s781_s1] sm:$0x3f] (!%p192_p10)   ;;  %vm278_vm0 = vcmask (!%p192_p10), 1045504   ;;  %s474_s28 = sshll.u32 (!%p192_p10), %s625_s15, 1  ;;  %vm636_vm1 = vmmov (!%p192_p10), 0  }
   0xf   : > { %195 = sbr.rel (%p192_p10) target bundleno = 257 (0x101), region = 32  ;;  %488 = vmatprep.subr.bf16.mxu0 (!%p192_p10), %v635_v0  ;;  %490 = vmatprep.mubr.msk.bf16.mxu0 (!%p192_p10), %vm636_vm1, %v635_v0  ;;  %p230_p11 = scmp.lt.s32.totalorder (!%p192_p10), %s474_s28, 3  ;;  %v280_v2 = vsel (!%p192_p10), %vm278_vm0, %v553_v1, 0  ;;  %vm274_vm2 = vcmask (!%p192_p10), 97280   ;;  %v479_v5 = vld [vmem:[%s782_s2] ss:$0 sm:$0xff] (!%p192_p10) }
  0x10   : > { %489 = vmatpush3.bf16.msra.mxu0 (!%p192_p10), %v280_v2  ;;  %s226_s6 = sand.u32 (!%p192_p10), 1, %s617_s13   ;;  %s485_s10 = sshll.u32 (!%p192_p10), %s625_s15, 8 }
  0x11   : > { %s473_s7 = sshll.u32 (!%p192_p10), %s226_s6, 4  ;;  %s730_s23 = scalar_lea.hbm (!%p192_p10), %s783_s3, %s485_s10 }
  0x12   : > { %s228_s11 = scalar_lea.vmem (!%p192_p10), [#allocation2], %s473_s7  ;;  %s734_s26 = scalar_lea.sflag (!%p192_p10), [#allocation3], %s226_s6 }
  0x13   : > { %s358_s18 = sshll.u32 (!%p192_p10), %s228_s11, 4  ;;  %s637_s27 = smov (!%p192_p10), [#allocation2]   ;;  %s732_s18 = int_to_ptr.vmem [resolvable:$true] %s358_s18 }
  0x14   : > { %s555_s15 = scalar_lea.vmem (!%p192_p10), %s732_s18, 256 }
  0x15   : > { %p556_p12 = scmp.ne.s32.totalorder (!%p192_p10), %s732_s18, %s555_s15 }
  0x16   : > { %s794_s28 = smov (!%p230_p11, %s474_s28), 3 }
  0x17   : > { %s475_s29 = sshll.u32 %s794_s28, 2  ;;  %p557_p13 = pnand %p556_p12, %p700_p4 }
  0x18   : > { %s236_s5 = scalar_lea.vmem %s780_s0, %s475_s29  ;;  %s559_s28 = sshll.u32 %s637_s27, 4  ;;  %s560_s28 = int_to_ptr.vmem [resolvable:$false] %s559_s28 }
  0x19   : > { %v554_v3 = vld [vmem:[%s236_s5] sm:$0xff]   ;;  %p558_p0 = pneg %p557_p13  ;;  %s561_s29 = scalar_lea.vmem %s560_s28, 512 }
  0x1a   : > { %491 = vmatmul.mubr.msk.bf16.vlgmr.msra.gmra.mrb[0].mxu0 %vm274_vm2, %v554_v3  ;;  %p562_p1 = scmp.lt.s32.totalorder %s732_s18, %s560_s28  ;;  %p563_p2 = scmp.lt.s32.totalorder %s561_s29, %s555_s15 }
  0x1c   : > { %p564_p3 = por %p563_p2, %p562_p1 }
  0x1e   : > { %p565_p5 = pnand %p564_p3, %p558_p0 }
  0xed   : > { %v316_v4 = vpop.f32.mrb[0].mxu0 }
  0xee   : > { %v492_v6 = vpop.f32.mrb[1].mxu0  ;;  %v339_v8 = vadd.f32 %v479_v5, %v316_v4 }
  0xef   : > { %v319_v7 = vpop.f32.mrb[2].mxu0 }
  0xf0   : > { %v493_v9 = vpop.f32.mrb[3].mxu0  ;;  %341 = vst [vmem:[%s228_s11] sm:$0xff] %v339_v8  ;;  %v340_v10 = vadd.f32 %v479_v5, %v319_v7 }
  0xf2   : > { %342 = vst [vmem:[%s228_s11 + $0x8] sm:$0xff] %v340_v10 }
  0xf3   : > { %568 = shalt.err (!%p565_p5)
}
  0xf4   : > { %s569_s30 = scalar_lea.hbm %s730_s23, 256  ;;  %s573_s6 = scalar_lea.hbm %s783_s3, 512 }
  0xf5   : > { %p570_p6 = scmp.ne.s32.totalorder %s730_s23, %s569_s30  ;;  %p574_p10 = scmp.lt.u32.totalorder %s730_s23, %s783_s3 }
  0xf6   : > { %p575_p11 = scmp.lt.u32.totalorder %s573_s6, %s569_s30  ;;  %p577_p13 = scmp.lt.u32.totalorder %s569_s30, %s730_s23 }
  0xf7   : > { %p571_p7 = pnand %p570_p6, %p700_p4 }
  0xf8   : > { %p576_p12 = por %p575_p11, %p574_p10 }
  0xf9   : > { %p572_p9 = pneg %p571_p7 }
  0xfa   : > { %p578_p0 = por %p577_p13, %p576_p12 }
  0xfc   : > { %p579_p1 = pnand %p578_p0, %p572_p9 }
  0xfe   : > { %582 = shalt.err (!%p579_p1)
}
  0xff   : > { %s638_s9 = smov 128   ;;  %s639_s10 = smov 8  }
 0x100   : > { %494 = dma.vmem_to_hbm [thread:$0]  (%p700_p4), %s732_s18, 256, %s730_s23, %s734_s26, %s638_s9, %s638_s9, %s639_s10  }
 0x101 PF: > { %p500_p2 = scmp.ge.s32.totalorder %s633_s17, 2  ;;  %s373_s11 = sand.u32 1, %s613_s12  }
 0x102   : > { %s374_s19 = scalar_lea.sflag [#allocation3], %s373_s11 }
 0x103   : > { %p497_p3 = pnand %p500_p2, %p707_p8 }
 0x105   : > { %608 = dma.done.wait (!%p497_p3), %s374_s19, 256  }
 0x106   : > { %610 = vsyncadd (!%p497_p3), %s374_s19, 4294967040  ;;  %s16_s17 = sadd.s32 1, %s633_s17   ;;  %s786_s12 = smov %s617_s13 }
 0x107   : > { %p13_p5 = scmp.ge.s32.totalorder %s16_s17, 4   ;;  %s787_s13 = smov %s621_s14 }
 0x108   : > { %s788_s14 = smov %s713_s25  ;;  %s789_s15 = smov %s629_s16 }
 0x109   : > { %s790_s16 = smov %s792_s20  ;;  %15 = sbr.rel (!%p13_p5) target bundleno = 4 (0x4), region = 81 }
 0x110   :  { %379 = vsyncpa [#allocation3], 1 }
 0x111   :  { %381 = vsyncpa [#allocation3 + $0x1], 1 }

</bundles_post_ra>
